<compile_context>
chip_gen: v7x
topology: tpu7x:2x2x1
jax: 0.10.0
libtpu: 0.0.40
codegen_flags: <defaults>
</compile_context>

<pallas_src>
import functools
import numpy as np
import jax
import jax.numpy as jnp
from jax.experimental import pallas as pl
from jax.experimental.pallas import tpu as pltpu

# Per-pipeline-stage block budget (bytes): double-buffered inputs + output.  Conservative so it
# fits v5e's 16 MiB default scoped VMEM with headroom; also fine on v6e (32 MiB) and v7x (64 MiB).
_BLOCK_BUDGET_BYTES = 6 * 1024 * 1024
# Below this output size, kernel-launch + per-grid-step overhead dominates; use XLA's concat.
_SMALL_FALLBACK_BYTES = 1 << 20


def _sublane_multiple(dtype) -> int:
    """Native sublane tile: 8 rows for 32-bit, 16 for 16-bit, 32 for 8-bit dtypes."""
    bits = jnp.dtype(dtype).itemsize * 8
    if bits >= 32:
        return 8
    if bits == 16:
        return 16
    return 32


def _col_concat_kernel(*refs, offsets, widths):
    """Column-window concat: input i -> output columns [off_i, off_i + w_i). Offsets static."""
    *in_refs, o_ref = refs
    for ref, off, w in zip(in_refs, offsets, widths):
        # In-kernel cast rides the VPU (idle in this DMA-bound kernel); no wrapper HBM copies.
        o_ref[:, off:off + w] = ref[...].astype(o_ref.dtype)


def _row_concat_kernel(*refs, row_offsets, row_counts):
    """Row-range concat (dim==0 view): input i -> output rows [r0_i, r0_i + r_i)."""
    *in_refs, o_ref = refs
    for ref, r0, r in zip(in_refs, row_offsets, row_counts):
        o_ref[r0:r0 + r, :] = ref[...].astype(o_ref.dtype)


def _choose_row_tile(P, W_total, itemsize, sub, budget):
    """Rows per block for the column-window path; None => does not fit, caller falls back."""
    per_row = max(1, 4 * W_total * itemsize)          # 2x(in + out), double-buffered
    cap_rows = budget // per_row
    if P <= sub:
        return P if cap_rows >= P else None           # full-extent block is always a legal shape
    if cap_rows < sub:
        return None                                   # too wide even at one native sublane tile
    tm = (cap_rows // sub) * sub
    # Prefer >= ~8 grid steps when P allows it: both v7x TensorCores get work and the
    # double-buffered DMA pipeline has depth to hide HBM latency.
    steps_cap = max(sub, ((P // 8) // sub) * sub) if P >= 8 * sub else sub
    return max(sub, min(tm, steps_cap))


def _choose_col_tile(R_total, Q, itemsize, budget):
    """Columns per block for the dim==0 (row-range) path; None => fall back."""
    per_col = max(1, 4 * R_total * itemsize)
    cap_cols = budget // per_col
    if Q <= 128:
        return Q if cap_cols >= Q else None
    if cap_cols < 128:
        return None
    tc = (cap_cols // 128) * 128
    steps_cap = max(128, ((Q // 8) // 128) * 128) if Q >= 8 * 128 else 128
    return max(128, min(tc, steps_cap))


def pallas_concat(tensors, dim, *,
                  small_bytes_fallback=_SMALL_FALLBACK_BYTES,
                  block_budget_bytes=_BLOCK_BUDGET_BYTES):
    """jnp equivalent of torch.cat(tensors, dim), executed by a Pallas TPU streaming kernel."""
    tensors = [jnp.asarray(t) for t in tensors]
    assert len(tensors) >= 1
    nd = tensors[0].ndim
    assert nd >= 1, "torch.cat requires tensors with at least 1 dim"
    d = dim % nd
    base = list(tensors[0].shape)
    for t in tensors:
        assert t.ndim == nd
        for ax in range(nd):
            if ax != d:
                assert t.shape[ax] == base[ax], "non-concat dims must match"

    # NOTE: dtype promotion follows jnp.result_type; torch.cat promotion may differ slightly
    # for exotic mixes, but the copy itself is bit-exact.
    out_dtype = jnp.result_type(*[t.dtype for t in tensors])
    itemsize = jnp.dtype(out_dtype).itemsize

    # Drop zero-width inputs: they contribute nothing and would create zero-sized blocks.
    nonempty = [t for t in tensors if int(t.shape[d]) > 0]
    out_dim = sum(int(t.shape[d]) for t in tensors)
    out_shape = tuple(base[:d]) + (out_dim,) + tuple(base[d + 1:])
    total_out_bytes = int(np.prod(out_shape, dtype=np.int64)) * itemsize

    if not nonempty or total_out_bytes == 0:
        return jnp.zeros(out_shape, out_dtype)
    if len(nonempty) == 1:
        return nonempty[0].astype(out_dtype)
    if total_out_bytes < small_bytes_fallback:
        # Tiny: launch + per-step overhead dominates; XLA's native concat wins.
        return jnp.concatenate(nonempty, axis=d).astype(out_dtype)

    sizes = [int(t.shape[d]) for t in nonempty]
    P = int(np.prod(base[:d], dtype=np.int64)) if d > 0 else 1
    Q = int(np.prod(base[d + 1:], dtype=np.int64)) if d < nd - 1 else 1
    sub = max(_sublane_multiple(out_dtype), *[_sublane_multiple(t.dtype) for t in nonempty])

    if d == 0:
        # Row-range view: output is (R_total, Q); input i occupies a contiguous row range.
        R_total = sum(sizes)
        row_offsets = [int(o) for o in np.cumsum([0] + sizes[:-1])]
        tc = _choose_col_tile(R_total, Q, itemsize, block_budget_bytes)
        if tc is None:
            # TODO(synk): add a two-level (row + column) tiled variant for huge dim==0 concats.
            return jnp.concatenate(nonempty, axis=d).astype(out_dtype)
        mats = [t.reshape(s, Q) for t, s in zip(nonempty, sizes)]
        grid = (pl.cdiv(Q, tc),)
        in_specs = [pl.BlockSpec((s, tc), lambda j: (0, j)) for s in sizes]
        out_specs = pl.BlockSpec((R_total, tc), lambda j: (0, j))
        out2d = pl.pallas_call(
            functools.partial(_row_concat_kernel,
                              row_offsets=tuple(row_offsets), row_counts=tuple(sizes)),
            out_shape=jax.ShapeDtypeStruct((R_total, Q), out_dtype),
            grid=grid,
            in_specs=in_specs,
            out_specs=out_specs,
            compiler_params=pltpu.CompilerParams(dimension_semantics=("parallel",)),
            cost_estimate=pl.CostEstimate(flops=0, transcendentals=0,
                                          bytes_accessed=int(2 * R_total * Q * itemsize)),
        )(*mats)
        return out2d.reshape(out_shape)

    # Column-window view: output is (P, W_total); input i occupies columns [off_i, off_i + w_i).
    widths = [s * Q for s in sizes]
    W_total = int(sum(widths))
    offsets = [int(o) for o in np.cumsum([0] + widths[:-1])]

    # Lane-misaligned column windows lower to cross-lane rotates + masked partial stores
    # (~4.5x worse); XLA's native concat handles those cases as well or better.
    if any(off % 128 != 0 for off in offsets):
        return jnp.concatenate(nonempty, axis=d).astype(out_dtype)

    tm = _choose_row_tile(P, W_total, itemsize, sub, block_budget_bytes)
    if tm is None:
        # TODO(synk): add a width-tiled variant for extremely wide concats instead of fallback.
        return jnp.concatenate(nonempty, axis=d).astype(out_dtype)

    mats = [t.reshape(P, w) for t, w in zip(nonempty, widths)]       # views, natural dtype
    grid = (pl.cdiv(P, tm),)                                         # ragged last block is OK
    in_specs = [pl.BlockSpec((tm, w), lambda i: (i, 0)) for w in widths]
    out_specs = pl.BlockSpec((tm, W_total), lambda i: (i, 0))

    out2d = pl.pallas_call(
        functools.partial(_col_concat_kernel, offsets=tuple(offsets), widths=tuple(widths)),
        out_shape=jax.ShapeDtypeStruct((P, W_total), out_dtype),
        grid=grid,
        in_specs=in_specs,
        out_specs=out_specs,
        compiler_params=pltpu.CompilerParams(dimension_semantics=("parallel",)),
        cost_estimate=pl.CostEstimate(flops=0, transcendentals=0,
                                      bytes_accessed=int(2 * P * W_total * itemsize)),
    )(*mats)
    return out2d.reshape(out_shape)


class ConcatenateLayer:
    """Mirror of the PyTorch module: forward(x: list, dim: int) -> cat(x, dim)."""

    def __call__(self, x, dim, **kwargs):
        return pallas_concat(x, dim, **kwargs)


if __name__ == "__main__":
    key = jax.random.PRNGKey(0)
    k1, k2, k3, k4, k5 = jax.random.split(key, 5)
    layer = ConcatenateLayer()

    # 1) Typical module use: concat 3 NCHW tensors along the channel dim.
    xs = [
        jax.random.normal(k1, (2, 4, 16, 16), jnp.float32),
        jax.random.normal(k2, (2, 6, 16, 16), jnp.float32),
        jax.random.normal(k3, (2, 2, 16, 16), jnp.float32),
    ]
    out_default = layer(xs, dim=1)                       # small-tensor fast path
    out_pallas = layer(xs, dim=1, small_bytes_fallback=0)  # force the Pallas column-window kernel
    out_pallas = jax.block_until_ready(out_pallas)
    ref = jnp.concatenate(xs, axis=1)
    assert out_pallas.shape == (2, 12, 16, 16), out_pallas.shape
    assert bool(jnp.array_equal(out_default, ref))
    assert bool(jnp.array_equal(out_pallas, ref))

    # 2) Ragged row count (P=10 not a multiple of the 8-row tile) -> exercises the cdiv grid.
    ys = [
        jax.random.normal(k4, (10, 3, 4, 32), jnp.float32),
        jax.random.normal(k5, (10, 5, 4, 32), jnp.float32),
    ]
    out_r = jax.block_until_ready(layer(ys, dim=1, small_bytes_fallback=0))
    assert bool(jnp.array_equal(out_r, jnp.concatenate(ys, axis=1)))

    # 3) dim == 0 -> exercises the row-range kernel.
    zs = [
        jax.random.normal(k1, (5, 4, 64), jnp.float32),
        jax.random.normal(k2, (7, 4, 64), jnp.float32),
    ]
    out_0 = jax.block_until_ready(layer(zs, dim=0, small_bytes_fallback=0))
    assert bool(jnp.array_equal(out_0, jnp.concatenate(zs, axis=0)))

    # 4) Mixed dtypes -> exercises the in-kernel cast (no wrapper astype copies).
    ms = [
        jax.random.normal(k3, (2, 4, 16, 16), jnp.float32),
        jax.random.normal(k4, (2, 6, 16, 16), jnp.bfloat16),
    ]
    out_m = jax.block_until_ready(layer(ms, dim=1, small_bytes_fallback=0))
    assert out_m.dtype == jnp.float32
    assert bool(jnp.array_equal(out_m, jnp.concatenate(ms, axis=1)))

    print("KERNEL_OK")
</pallas_src>

<mosaic_0001>
module attributes {stable_mosaic.version = 11 : i64} {
  func.func @_col_concat_kernel(%arg0: i32, %arg1: memref<2x1024xf32, #tpu.memory_space<vmem>>, %arg2: memref<2x1536xf32, #tpu.memory_space<vmem>>, %arg3: memref<2x512xf32, #tpu.memory_space<vmem>>, %arg4: memref<2x3072xf32, #tpu.memory_space<vmem>>) attributes {dimension_semantics = [#tpu.dimension_semantics<parallel>], iteration_bounds = array<i64: 1>, scalar_prefetch = 0 : i64, scratch_operands = 0 : i64, tpu.core_type = #tpu.core_type<tc>, window_params = [{transform_indices = @transform_0, window_bounds = array<i64: 2, 1024>}, {transform_indices = @transform_1, window_bounds = array<i64: 2, 1536>}, {transform_indices = @transform_2, window_bounds = array<i64: 2, 512>}, {transform_indices = @transform_3, window_bounds = array<i64: 2, 3072>}]} {
    %c0 = arith.constant 0 : index
    %c0_0 = arith.constant 0 : index
    %0 = vector.load %arg1[%c0, %c0_0] : memref<2x1024xf32, #tpu.memory_space<vmem>>, vector<2x1024xf32>
    %c0_1 = arith.constant 0 : index
    %c0_2 = arith.constant 0 : index
    %1 = vector.load %arg4[%c0_1, %c0_2] : memref<2x3072xf32, #tpu.memory_space<vmem>>, vector<2x1024xf32>
    tpu.vector_store %arg4[%c0_1, %c0_2], %0 {strides = array<i32>} : memref<2x3072xf32, #tpu.memory_space<vmem>>, vector<2x1024xf32>,
    %c0_3 = arith.constant 0 : index
    %c0_4 = arith.constant 0 : index
    %2 = vector.load %arg2[%c0_3, %c0_4] : memref<2x1536xf32, #tpu.memory_space<vmem>>, vector<2x1536xf32>
    %c0_5 = arith.constant 0 : index
    %c1024 = arith.constant 1024 : index
    %3 = vector.load %arg4[%c0_5, %c1024] : memref<2x3072xf32, #tpu.memory_space<vmem>>, vector<2x1536xf32>
    tpu.vector_store %arg4[%c0_5, %c1024], %2 {strides = array<i32>} : memref<2x3072xf32, #tpu.memory_space<vmem>>, vector<2x1536xf32>,
    %c0_6 = arith.constant 0 : index
    %c0_7 = arith.constant 0 : index
    %4 = vector.load %arg3[%c0_6, %c0_7] : memref<2x512xf32, #tpu.memory_space<vmem>>, vector<2x512xf32>
    %c0_8 = arith.constant 0 : index
    %c2560 = arith.constant 2560 : index
    %5 = vector.load %arg4[%c0_8, %c2560] : memref<2x3072xf32, #tpu.memory_space<vmem>>, vector<2x512xf32>
    tpu.vector_store %arg4[%c0_8, %c2560], %4 {strides = array<i32>} : memref<2x3072xf32, #tpu.memory_space<vmem>>, vector<2x512xf32>,
    return
  }
  func.func @transform_0(%arg0: i32) -> (i32, i32) {
    %c0_i32 = arith.constant 0 : i32
    %c0_i32_0 = arith.constant 0 : i32
    return %arg0, %c0_i32 : i32, i32
  }
  func.func @transform_1(%arg0: i32) -> (i32, i32) {
    %c0_i32 = arith.constant 0 : i32
    %c0_i32_0 = arith.constant 0 : i32
    return %arg0, %c0_i32 : i32, i32
  }
  func.func @transform_2(%arg0: i32) -> (i32, i32) {
    %c0_i32 = arith.constant 0 : i32
    %c0_i32_0 = arith.constant 0 : i32
    return %arg0, %c0_i32 : i32, i32
  }
  func.func @transform_3(%arg0: i32) -> (i32, i32) {
    %c0_i32 = arith.constant 0 : i32
    %c0_i32_0 = arith.constant 0 : i32
    return %arg0, %c0_i32 : i32, i32
  }
}

</mosaic_0001>

<bundles_post_ra>
// kernel: tpu_custom_call.1
= control target key start
LH: loop header
LB: loop body
LE: loop exit
PB: predicated region body
PF: predicated region fallthrough
CT: control target
= control target key end

     0   :  { %8 = vsyncpa [#allocation3], 0  ;;  %s248_s0 = inlined_call_operand.hbm [shape: f32[2,1024], index: 0, kind: input, shape index: {}]   ;;  %s249_s1 = inlined_call_operand.hbm [shape: f32[2,1536], index: 1, kind: input, shape index: {}]   ;;  %s250_s2 = inlined_call_operand.hbm [shape: f32[2,512], index: 2, kind: input, shape index: {}]   ;;  %s251_s3 = inlined_call_operand.hbm [shape: f32[2,3072], index: 3, kind: output, shape index: {}]  }
   0x1   :  { %9 = vsyncpa [#allocation6], 0 }
   0x2   :  { %10 = vsyncpa [#allocation4], 0  ;;  %s176_s12 = smov [#allocation5]   ;;  %s177_s14 = smov [#allocation2]  }
   0x3   :  { %s27_s13 = sshll.u32 %s176_s12, 4  ;;  %s17_s15 = sshll.u32 %s177_s14, 4  ;;  %s28_s13 = int_to_ptr.vmem [resolvable:$true] %s27_s13  ;;  %s18_s15 = int_to_ptr.vmem [resolvable:$true] %s17_s15 }
   0x4   :  { %s82_s18 = scalar_lea.hbm %s249_s1, 384 }
   0x5   :  { %p83_p0 = scmp.ne.s32.totalorder %s249_s1, %s82_s18  ;;  %p86_p1 = scmp.lt.u32.totalorder %s82_s18, %s249_s1 }
   0x7   :  { %p88_p2 = pnand %p86_p1, %p83_p0 }
   0x9   :  { %91 = shalt.err (!%p88_p2)
}
   0xa   :  { %s92_s23 = scalar_lea.vmem %s28_s13, 384  ;;  %p97_p4 = scmp.lt.s32.totalorder %s28_s13, %s28_s13 }
   0xb   :  { %p93_p3 = scmp.ne.s32.totalorder %s28_s13, %s92_s23  ;;  %p98_p5 = scmp.lt.s32.totalorder %s92_s23, %s92_s23 }
   0xd   :  { %p99_p6 = por %p98_p5, %p97_p4 }
   0xf   :  { %p100_p7 = pnand %p99_p6, %p93_p3 }
  0x11   :  { %103 = shalt.err (!%p100_p7)
}
  0x12   :  { %30 = dma.hbm_to_vmem [thread:$0]  %s249_s1, 384, %s28_s13, [#allocation6]  }
  0x13   :  { %s104_s28 = scalar_lea.hbm %s248_s0, 256 }
  0x14   :  { %p105_p8 = scmp.ne.s32.totalorder %s248_s0, %s104_s28  ;;  %p108_p9 = scmp.lt.u32.totalorder %s104_s28, %s248_s0 }
  0x16   :  { %p110_p10 = pnand %p108_p9, %p105_p8 }
  0x18   :  { %113 = shalt.err (!%p110_p10)
}
  0x19   :  { %s114_s6 = scalar_lea.vmem %s18_s15, 256  ;;  %p119_p12 = scmp.lt.s32.totalorder %s18_s15, %s18_s15 }
  0x1a   :  { %p115_p11 = scmp.ne.s32.totalorder %s18_s15, %s114_s6  ;;  %p120_p13 = scmp.lt.s32.totalorder %s114_s6, %s114_s6 }
  0x1c   :  { %p121_p0 = por %p120_p13, %p119_p12 }
  0x1e   :  { %p122_p1 = pnand %p121_p0, %p115_p11 }
  0x20   :  { %125 = shalt.err (!%p122_p1)
}
  0x21   :  { %20 = dma.hbm_to_vmem [thread:$0]  %s248_s0, 256, %s18_s15, [#allocation3]  }
  0x22   :  { %s178_s8 = smov [#allocation7]   ;;  %s126_s12 = scalar_lea.hbm %s250_s2, 128 }
  0x23   :  { %s37_s9 = sshll.u32 %s178_s8, 4  ;;  %p127_p2 = scmp.ne.s32.totalorder %s250_s2, %s126_s12  ;;  %s38_s9 = int_to_ptr.vmem [resolvable:$true] %s37_s9 }
  0x24   :  { %p130_p3 = scmp.lt.u32.totalorder %s126_s12, %s250_s2 }
  0x26   :  { %p132_p4 = pnand %p130_p3, %p127_p2 }
  0x28   :  { %135 = shalt.err (!%p132_p4)
}
  0x29   :  { %s136_s18 = scalar_lea.vmem %s38_s9, 128  ;;  %p141_p6 = scmp.lt.s32.totalorder %s38_s9, %s38_s9 }
  0x2a   :  { %p137_p5 = scmp.ne.s32.totalorder %s38_s9, %s136_s18  ;;  %p142_p7 = scmp.lt.s32.totalorder %s136_s18, %s136_s18 }
  0x2c   :  { %p143_p8 = por %p142_p7, %p141_p6 }
  0x2e   :  { %p144_p9 = pnand %p143_p8, %p137_p5 }
  0x30   :  { %147 = shalt.err (!%p144_p9)
}
  0x31   :  { %40 = dma.hbm_to_vmem [thread:$0]  %s250_s2, 128, %s38_s9, [#allocation6]  }
  0x32   :  { %170 = dma.done.wait [#allocation3], 256  }
  0x33   :  { %171 = vsyncadd [#allocation3], 4294967040 }
  0x34   :  { %172 = dma.done.wait [#allocation6], 512  }
  0x35   :  { %173 = vsyncadd [#allocation6], 4294966784  ;;  %s179_s19 = smov [#allocation8]   ;;  %v50_v0 = vld [vmem:[#allocation2] sm:$0xff]  ;;  %v51_v1 = vld [vmem:[#allocation2 + $0x8] sm:$0xff] }
  0x36   :  { %s68_s20 = sshll.u32 %s179_s19, 4  ;;  %v54_v2 = vld [vmem:[#allocation5] sm:$0xff]  ;;  %52 = vst [vmem:[#allocation8] sm:$0xff] %v50_v0  ;;  %53 = vst [vmem:[#allocation8 + $0x8] sm:$0xff] %v51_v1  ;;  %v55_v3 = vld [vmem:[#allocation5 + $0x8] sm:$0xff]  ;;  %s69_s20 = int_to_ptr.vmem [resolvable:$true] %s68_s20 }
  0x37   :  { %57 = vst [vmem:[#allocation8 + $0x10] sm:$0xff] %v54_v2  ;;  %v56_v4 = vld [vmem:[#allocation5 + $0x10] sm:$0xff]  ;;  %v60_v5 = vld [vmem:[#allocation7] sm:$0xff]  ;;  %58 = vst [vmem:[#allocation8 + $0x18] sm:$0xff] %v55_v3  ;;  %s148_s2 = scalar_lea.vmem %s69_s20, 768  ;;  %p153_p11 = scmp.lt.s32.totalorder %s69_s20, %s69_s20 }
  0x38   :  { %59 = vst [vmem:[#allocation8 + $0x20] sm:$0xff] %v56_v4  ;;  %61 = vst [vmem:[#allocation8 + $0x28] sm:$0xff] %v60_v5  ;;  %p149_p10 = scmp.ne.s32.totalorder %s69_s20, %s148_s2  ;;  %p154_p12 = scmp.lt.s32.totalorder %s148_s2, %s148_s2 }
  0x3a   :  { %p155_p13 = por %p154_p12, %p153_p11 }
  0x3c   :  { %p156_p0 = pnand %p155_p13, %p149_p10 }
  0x3e   :  { %159 = shalt.err (!%p156_p0)
}
  0x3f   :  { %s160_s23 = scalar_lea.hbm %s251_s3, 768 }
  0x40   :  { %p161_p1 = scmp.ne.s32.totalorder %s251_s3, %s160_s23  ;;  %p164_p2 = scmp.lt.u32.totalorder %s160_s23, %s251_s3 }
  0x42   :  { %p166_p3 = pnand %p164_p2, %p161_p1 }
  0x44   :  { %169 = shalt.err (!%p166_p3)
}
  0x45   :  { %71 = dma.vmem_to_hbm [thread:$0]  %s69_s20, 768, %s251_s3, [#allocation4]  }
  0x46   :  { %174 = dma.done.wait [#allocation4], 768  }
  0x47   :  { %175 = vsyncadd [#allocation4], 4294966528 }
  0x48   :  { %75 = vsyncpa [#allocation3], 1 }
  0x49   :  { %76 = vsyncpa [#allocation6], 1 }
  0x4a   :  { %77 = vsyncpa [#allocation4], 1 }

</bundles_post_ra>
